<compile_context>
chip_gen: v7x
topology: tpu7x:2x2x1
jax: 0.10.0
libtpu: 0.0.40
codegen_flags: <defaults>
</compile_context>

<pallas_src>
import jax
import jax.numpy as jnp
from jax.experimental import pallas as pl
from jax.experimental.pallas import tpu as pltpu

BN_EPS = 1e-5


def _round_up(x, m):
    return (x + m - 1) // m * m


def _conv_stats_kernel(x_ref, w_ref, y_ref, psum_ref, psumsq_ref):
    # x_ref:      (tile_rows, K_pad)    mxu_dtype  -- im2col patch rows
    # w_ref:      (K_pad, Cout_pad)     mxu_dtype  -- folded conv weights
    # y_ref:      (tile_rows, Cout_pad) f32        -- conv output tile (lane dense)
    # psum_ref:   (1, 1, Cout_pad)      f32        -- per-tile BN partial sum
    # psumsq_ref: (1, 1, Cout_pad)      f32        -- per-tile BN partial sum of squares
    acc = jnp.dot(x_ref[...], w_ref[...], preferred_element_type=jnp.float32)
    y_ref[...] = acc
    cout = psum_ref.shape[-1]
    psum_ref[...] = jnp.sum(acc, axis=0, keepdims=True).reshape(1, 1, cout)
    psumsq_ref[...] = jnp.sum(acc * acc, axis=0, keepdims=True).reshape(1, 1, cout)


def _bn_affine_kernel(y_ref, scale_ref, shift_ref, o_ref):
    # Folded BatchNorm affine: one multiply-add per element.
    o_ref[...] = y_ref[...] * scale_ref[...] + shift_ref[...]


def basic_conv2d(x_nchw, w_oihw, gamma, beta, *, stride=1, padding=0, dilation=1,
                 tile_rows=256, mxu_dtype=jnp.bfloat16):
    """Conv2d(bias=False) + BatchNorm2d (training-mode batch stats), matching
    BasicConv2d.forward (no ReLU applied)."""
    N, Cin, H, W = x_nchw.shape
    Cout, _, KH, KW = w_oihw.shape

    # ---- wrapper-side layout plumbing: NCHW -> NHWC, zero-pad, im2col ----
    # TODO(synk): if the surrounding model were kept in NHWC end-to-end these
    # activation transposes (extra HBM round trips) would disappear entirely.
    x = jnp.transpose(x_nchw, (0, 2, 3, 1)).astype(jnp.float32)          # NHWC
    xp = jnp.pad(x, ((0, 0), (padding, padding), (padding, padding), (0, 0)))
    Hp, Wp = H + 2 * padding, W + 2 * padding
    Ho = (Hp - dilation * (KH - 1) - 1) // stride + 1
    Wo = (Wp - dilation * (KW - 1) - 1) // stride + 1

    cols = []
    for kh in range(KH):
        for kw in range(KW):
            h0, w0 = kh * dilation, kw * dilation
            cols.append(xp[:, h0:h0 + (Ho - 1) * stride + 1:stride,
                            w0:w0 + (Wo - 1) * stride + 1:stride, :])
    patches = jnp.concatenate(cols, axis=-1)                  # (N, Ho, Wo, KH*KW*Cin)

    K = KH * KW * Cin
    rows = N * Ho * Wo
    K_pad = _round_up(K, 128)                                 # lane-dense contraction
    Cout_pad = _round_up(Cout, 128)                           # lane-dense channels
    rows_pad = _round_up(rows, tile_rows)
    num_tiles = rows_pad // tile_rows

    patches2d = patches.reshape(rows, K)
    patches2d = jnp.pad(patches2d,
                        ((0, rows_pad - rows), (0, K_pad - K))).astype(mxu_dtype)

    # OIHW -> HWIO -> (KH*KW*Cin, Cout); ordering matches the im2col concat order.
    w2 = jnp.transpose(w_oihw, (2, 3, 1, 0)).astype(jnp.float32).reshape(K, Cout)
    w2 = jnp.pad(w2, ((0, K_pad - K), (0, Cout_pad - Cout))).astype(mxu_dtype)

    # ---- pass 1: conv (one MXU matmul per row tile) + per-tile BN partials ----
    conv_out, psum, psumsq = pl.pallas_call(
        _conv_stats_kernel,
        out_shape=(
            jax.ShapeDtypeStruct((rows_pad, Cout_pad), jnp.float32),
            jax.ShapeDtypeStruct((num_tiles, 1, Cout_pad), jnp.float32),
            jax.ShapeDtypeStruct((num_tiles, 1, Cout_pad), jnp.float32),
        ),
        grid=(num_tiles,),
        in_specs=[
            pl.BlockSpec((tile_rows, K_pad), lambda i: (i, 0)),
            pl.BlockSpec((K_pad, Cout_pad), lambda i: (0, 0)),   # weights stay resident
        ],
        out_specs=(
            pl.BlockSpec((tile_rows, Cout_pad), lambda i: (i, 0)),
            pl.BlockSpec((1, 1, Cout_pad), lambda i: (i, 0, 0)),
            pl.BlockSpec((1, 1, Cout_pad), lambda i: (i, 0, 0)),
        ),
        compiler_params=pltpu.CompilerParams(dimension_semantics=("parallel",)),
    )(patches2d, w2)

    # ---- global BN batch statistics (tiny reduction over per-tile partials) ----
    # Padded rows / channels are exactly zero, so they contribute 0 to both sums;
    # dividing by the true element count keeps the statistics exact.
    n = jnp.float32(rows)
    mean = jnp.sum(psum, axis=0).reshape(Cout_pad) / n
    var = jnp.maximum(jnp.sum(psumsq, axis=0).reshape(Cout_pad) / n - mean * mean, 0.0)
    # TODO(synk): for extreme activation magnitudes a centered (Welford-style)
    # variance combine would be preferable to E[x^2] - mean^2.
    gamma_p = jnp.pad(gamma.astype(jnp.float32).reshape(-1), (0, Cout_pad - Cout))
    beta_p = jnp.pad(beta.astype(jnp.float32).reshape(-1), (0, Cout_pad - Cout))
    inv_std = jax.lax.rsqrt(var + BN_EPS)
    scale = (gamma_p * inv_std).reshape(1, Cout_pad)
    shift = (beta_p - mean * gamma_p * inv_std).reshape(1, Cout_pad)

    # ---- pass 2: folded-affine normalization, lane-dense in/out ----
    out_p = pl.pallas_call(
        _bn_affine_kernel,
        out_shape=jax.ShapeDtypeStruct((rows_pad, Cout_pad), jnp.float32),
        grid=(num_tiles,),
        in_specs=[
            pl.BlockSpec((tile_rows, Cout_pad), lambda i: (i, 0)),
            pl.BlockSpec((1, Cout_pad), lambda i: (0, 0)),
            pl.BlockSpec((1, Cout_pad), lambda i: (0, 0)),
        ],
        out_specs=pl.BlockSpec((tile_rows, Cout_pad), lambda i: (i, 0)),
        compiler_params=pltpu.CompilerParams(dimension_semantics=("parallel",)),
    )(conv_out, scale, shift)

    # TODO(synk): PyTorch BatchNorm2d in training mode also updates
    # running_mean/running_var (with unbiased variance); module-state updates are
    # outside the scope of this forward-only kernel.
    out = out_p[:rows, :Cout].reshape(N, Ho, Wo, Cout)
    return jnp.transpose(out, (0, 3, 1, 2))                   # back to NCHW


def _reference(x_nchw, w_oihw, gamma, beta, *, stride, padding, dilation):
    # Pure-JAX fp32 reference for validation.
    y = jax.lax.conv_general_dilated(
        x_nchw.astype(jnp.float32), w_oihw.astype(jnp.float32),
        window_strides=(stride, stride),
        padding=[(padding, padding), (padding, padding)],
        rhs_dilation=(dilation, dilation),
        dimension_numbers=("NCHW", "OIHW", "NCHW"))
    mean = jnp.mean(y, axis=(0, 2, 3), keepdims=True)
    var = jnp.mean((y - mean) ** 2, axis=(0, 2, 3), keepdims=True)
    g = gamma.reshape(1, -1, 1, 1)
    b = beta.reshape(1, -1, 1, 1)
    return (y - mean) * jax.lax.rsqrt(var + BN_EPS) * g + b


if __name__ == "__main__":
    key = jax.random.PRNGKey(0)

    # (N, Cin, H, W, Cout, k, stride, padding, dilation, mxu_dtype, tolerance)
    configs = [
        (2, 4, 16, 16, 8, 3, 1, 1, 1, jnp.bfloat16, 5e-2),  # bf16 MXU inputs, fp32 acc
        (2, 3, 17, 17, 8, 3, 2, 0, 1, jnp.float32, 1e-3),   # strided conv
        (1, 4, 16, 16, 8, 3, 1, 2, 2, jnp.float32, 1e-3),   # dilated conv
    ]

    for cfg in configs:
        N, Cin, H, W, Cout, k, stride, padding, dilation, mxu_dtype, tol = cfg
        key, kx, kw, kg, kb = jax.random.split(key, 5)
        x = jax.random.normal(kx, (N, Cin, H, W), dtype=jnp.float32)
        conv_w = jax.random.normal(kw, (Cout, Cin, k, k), dtype=jnp.float32) * 0.1
        gamma = 1.0 + 0.1 * jax.random.normal(kg, (Cout,), dtype=jnp.float32)
        beta = 0.1 * jax.random.normal(kb, (Cout,), dtype=jnp.float32)

        out = basic_conv2d(x, conv_w, gamma, beta, stride=stride, padding=padding,
                           dilation=dilation, mxu_dtype=mxu_dtype)
        out = jax.block_until_ready(out)

        ref = _reference(x, conv_w, gamma, beta, stride=stride, padding=padding,
                         dilation=dilation)
        assert out.shape == ref.shape, (out.shape, ref.shape)
        err = float(jnp.max(jnp.abs(out - ref)))
        # bf16 tolerance covers MXU-input rounding (~1e-2 at these scales); fp32 is tight.
        assert err < tol, f"mismatch vs reference: err={err} tol={tol} cfg={cfg[:9]}"

    print("KERNEL_OK")
</pallas_src>

<mosaic_0001>
module attributes {stable_mosaic.version = 11 : i64} {
  func.func @_conv_stats_kernel(%arg0: i32, %arg1: memref<256x128xbf16, #tpu.memory_space<vmem>>, %arg2: memref<128x128xbf16, #tpu.memory_space<vmem>>, %arg3: memref<256x128xf32, #tpu.memory_space<vmem>>, %arg4: memref<1x1x128xf32, #tpu.memory_space<vmem>>, %arg5: memref<1x1x128xf32, #tpu.memory_space<vmem>>) attributes {dimension_semantics = [#tpu.dimension_semantics<parallel>], iteration_bounds = array<i64: 2>, scalar_prefetch = 0 : i64, scratch_operands = 0 : i64, tpu.core_type = #tpu.core_type<tc>, window_params = [{transform_indices = @transform_0, window_bounds = array<i64: 256, 128>}, {pipeline_mode = #tpu.pipeline_mode<synchronous>, transform_indices = @transform_1, window_bounds = array<i64: 128, 128>}, {transform_indices = @transform_2, window_bounds = array<i64: 256, 128>}, {transform_indices = @transform_3, window_bounds = array<i64: 1, 1, 128>}, {transform_indices = @transform_4, window_bounds = array<i64: 1, 1, 128>}]} {
    %c0 = arith.constant 0 : index
    %c0_0 = arith.constant 0 : index
    %0 = vector.load %arg1[%c0, %c0_0] : memref<256x128xbf16, #tpu.memory_space<vmem>>, vector<256x128xbf16>
    %c0_1 = arith.constant 0 : index
    %c0_2 = arith.constant 0 : index
    %1 = vector.load %arg2[%c0_1, %c0_2] : memref<128x128xbf16, #tpu.memory_space<vmem>>, vector<128x128xbf16>
    %cst = arith.constant dense<0.000000e+00> : vector<256x128xf32>
    %2 = tpu.matmul %0, %1, %cst {dimension_numbers = #tpu.dot_dimension_numbers<[1], [0], [0], [1], [0, 0, 1, 1], [], []>} : vector<256x128xbf16>, vector<128x128xbf16>, vector<256x128xf32> -> vector<256x128xf32>
    %c0_3 = arith.constant 0 : index
    %c0_4 = arith.constant 0 : index
    %3 = vector.load %arg3[%c0_3, %c0_4] : memref<256x128xf32, #tpu.memory_space<vmem>>, vector<256x128xf32>
    tpu.vector_store %arg3[%c0_3, %c0_4], %2 {strides = array<i32>} : memref<256x128xf32, #tpu.memory_space<vmem>>, vector<256x128xf32>,
    %cst_5 = arith.constant dense<0.000000e+00> : vector<128xf32>
    %4 = vector.multi_reduction <add>, %2, %cst_5 [0] : vector<256x128xf32> to vector<128xf32>
    %5 = vector.shape_cast %4 : vector<128xf32> to vector<1x128xf32>
    %6 = vector.shape_cast %5 : vector<1x128xf32> to vector<1x1x128xf32>
    %c0_6 = arith.constant 0 : index
    %c0_7 = arith.constant 0 : index
    %c0_8 = arith.constant 0 : index
    %7 = vector.load %arg4[%c0_6, %c0_7, %c0_8] : memref<1x1x128xf32, #tpu.memory_space<vmem>>, vector<1x1x128xf32>
    tpu.vector_store %arg4[%c0_6, %c0_7, %c0_8], %6 {strides = array<i32>} : memref<1x1x128xf32, #tpu.memory_space<vmem>>, vector<1x1x128xf32>,
    %8 = arith.mulf %2, %2 : vector<256x128xf32>
    %cst_9 = arith.constant dense<0.000000e+00> : vector<128xf32>
    %9 = vector.multi_reduction <add>, %8, %cst_9 [0] : vector<256x128xf32> to vector<128xf32>
    %10 = vector.shape_cast %9 : vector<128xf32> to vector<1x128xf32>
    %11 = vector.shape_cast %10 : vector<1x128xf32> to vector<1x1x128xf32>
    %c0_10 = arith.constant 0 : index
    %c0_11 = arith.constant 0 : index
    %c0_12 = arith.constant 0 : index
    %12 = vector.load %arg5[%c0_10, %c0_11, %c0_12] : memref<1x1x128xf32, #tpu.memory_space<vmem>>, vector<1x1x128xf32>
    tpu.vector_store %arg5[%c0_10, %c0_11, %c0_12], %11 {strides = array<i32>} : memref<1x1x128xf32, #tpu.memory_space<vmem>>, vector<1x1x128xf32>,
    return
  }
  func.func @transform_0(%arg0: i32) -> (i32, i32) {
    %c0_i32 = arith.constant 0 : i32
    %c0_i32_0 = arith.constant 0 : i32
    return %arg0, %c0_i32 : i32, i32
  }
  func.func @transform_1(%arg0: i32) -> (i32, i32) {
    %c0_i32 = arith.constant 0 : i32
    %c0_i32_0 = arith.constant 0 : i32
    %c0_i32_1 = arith.constant 0 : i32
    return %c0_i32, %c0_i32_0 : i32, i32
  }
  func.func @transform_2(%arg0: i32) -> (i32, i32) {
    %c0_i32 = arith.constant 0 : i32
    %c0_i32_0 = arith.constant 0 : i32
    return %arg0, %c0_i32 : i32, i32
  }
  func.func @transform_3(%arg0: i32) -> (i32, i32, i32) {
    %c0_i32 = arith.constant 0 : i32
    %c0_i32_0 = arith.constant 0 : i32
    %c0_i32_1 = arith.constant 0 : i32
    return %arg0, %c0_i32, %c0_i32_0 : i32, i32, i32
  }
  func.func @transform_4(%arg0: i32) -> (i32, i32, i32) {
    %c0_i32 = arith.constant 0 : i32
    %c0_i32_0 = arith.constant 0 : i32
    %c0_i32_1 = arith.constant 0 : i32
    return %arg0, %c0_i32, %c0_i32_0 : i32, i32, i32
  }
}

</mosaic_0001>

<bundles_post_ra>
// kernel: tpu_custom_call.1
= control target key start
LH: loop header
LB: loop body
LE: loop exit
PB: predicated region body
PF: predicated region fallthrough
CT: control target
= control target key end

     0   :  { %10 = vsyncpa [#allocation3], 0  ;;  %s1807_s0 = inlined_call_operand.hbm [shape: bf16[512,128], index: 0, kind: input, shape index: {}]   ;;  %s1808_s1 = inlined_call_operand.hbm [shape: bf16[128,128], index: 1, kind: input, shape index: {}]   ;;  %s1809_s2 = inlined_call_operand.hbm [shape: f32[512,128], index: 2, kind: output, shape index: {0}]   ;;  %s1810_s3 = inlined_call_operand.hbm [shape: f32[2,1,128], index: 3, kind: output, shape index: {1}]   ;;  %s1811_s4 = inlined_call_operand.hbm [shape: f32[2,1,128], index: 4, kind: output, shape index: {2}]  }
   0x1   :  { %12 = vsyncpa [#allocation3 + $0x1], 0 }
   0x2   :  { %13 = vsyncpa [#allocation6], 0 }
   0x3   :  { %14 = vsyncpa [#allocation4], 0 }
   0x4   :  { %16 = vsyncpa [#allocation4 + $0x1], 0 }
   0x5   :  { %17 = vsyncpa [#allocation9], 0 }
   0x6   :  { %19 = vsyncpa [#allocation9 + $0x1], 0  ;;  %s1378_s15 = smov 0   ;;  %s1380_s16 = smov 0  }
   0x7   :  { %s1382_s17 = smov 0   ;;  %s1384_s18 = smov 0  }
   0x8 LB: > { %s1399_s19 = sadd.s32 4294967295, %s1342_s18   ;;  %s927_s20 = sadd.s32 4294967294, %s1342_s18   ;;  %s1342_s18 = sphi %s1384_s18, %s1831_s18   ;;  %s1338_s17 = sphi %s1382_s17, %s1830_s17   ;;  %s1334_s16 = sphi %s1380_s16, %s1829_s16   ;;  %s1330_s15 = sphi %s1378_s15, %s1828_s15  }
   0x9   : > { %p45_p0 = scmp.ne.s32.totalorder %s1334_s16, %s1330_s15  ;;  %p1812_p1 = scmp.eq.s32.totalorder %s1399_s19, 0 }
   0xa   : > { %p96_p3 = scmp.eq.s32.totalorder %s927_s20, 1  ;;  %p928_p5 = scmp.ge.s32.totalorder %s1342_s18, 1 }
   0xb   : > { %p1410_p4 = por %p1812_p1, %p45_p0  ;;  %p155_p7 = scmp.lt.s32.totalorder %s1342_s18, 3 }
   0xc   : > { %p1415_p6 = por %p96_p3, %p45_p0  ;;  %s1344_s24 = smov [#allocation5]  }
   0xd   : > { %s1815_s21 = scalar_select %p1410_p4, 1, 0 }
   0xe   : > { %s1816_s22 = scalar_select %p1415_p6, 1, 0 }
   0xf   : > { %p1420_p8 = pnand %p928_p5, %p155_p7  ;;  %s167_s25 = sshll.u32 %s1344_s24, 4  ;;  %s1424_s25 = int_to_ptr.vmem [resolvable:$true] %s167_s25 }
  0x10   : > { %s1436_s27 = sadd.s32 1, %s1342_s18   ;;  %s32_s28 = sadd.s32 1, %s1338_s17 }
  0x11   : > { %s1817_s23 = scalar_select %p1420_p8, 1, 0 }
  0x12   : > { %p1071_p9 = pneg %p1420_p8  ;;  %s29_s29 = ssub.s32 %s1342_s18, %s1436_s27 }
  0x13   : > { %s1154_s6 = scalar_lea.hbm %s1808_s1, 1024 }
  0x14   : > { %p1431_p11 = pnand %p1071_p9, %p1812_p1  ;;  %p1155_p12 = scmp.ne.s32.totalorder %s1808_s1, %s1154_s6 }
  0x15   : > { %p1161_p5 = scmp.lt.u32.totalorder %s1154_s6, %s1808_s1 }
  0x16   : > { %p1156_p13 = pneg %p1431_p11 }
  0x18   : > { %p1157_p0 = pnand %p1156_p13, %p1155_p12 }
  0x1a   : > { %p1158_p3 = pneg %p1157_p0 }
  0x1c   : > { %p1163_p7 = pnand %p1161_p5, %p1158_p3 }
  0x1e   : > { %1166 = shalt.err (!%p1163_p7)
}
  0x1f   : > { %s1167_s11 = scalar_lea.vmem %s1424_s25, 1024  ;;  %p1175_p2 = scmp.lt.s32.totalorder %s1424_s25, %s1424_s25 }
  0x20   : > { %p1168_p9 = scmp.ne.s32.totalorder %s1424_s25, %s1167_s11  ;;  %p1176_p6 = scmp.lt.s32.totalorder %s1167_s11, %s1167_s11 }
  0x22   : > { %p1170_p10 = pnand %p1168_p9, %p1156_p13  ;;  %p1177_p4 = por %p1176_p6, %p1175_p2 }
  0x24   : > { %p1171_p1 = pneg %p1170_p10 }
  0x26   : > { %p1178_p8 = pnand %p1177_p4, %p1171_p1 }
  0x28   : > { %1181 = shalt.err (!%p1178_p8)
}
  0x29   : > { %s1345_s12 = smov 64   ;;  %s1346_s13 = smov 4  }
  0x2a   : > { %1074 = dma.hbm_to_vmem [thread:$0]  (!%p1431_p11), %s1808_s1, 1024, %s1424_s25, [#allocation6], %s1345_s12, %s1345_s12, %s1346_s13  }
  0x2b   : > { %p30_p1 = scmp.eq.s32.totalorder %s29_s29, 0  ;;  %p39_p2 = scmp.ne.s32.totalorder %s1338_s17, %s1334_s16 }
  0x2c   : > { %p40_p4 = scmp.eq.s32.totalorder %s1342_s18, 0  ;;  %p1090_p6 = scmp.lt.s32.totalorder %s1342_s18, 2 }
  0x2d   : > { %s1470_s30 = scalar_select %p30_p1, %s1338_s17, %s32_s28  }
  0x2e   : > { %p41_p8 = por %p40_p4, %p39_p2  ;;  %p1819_p10 = scmp.eq.s32.totalorder %s1399_s19, 1 }
  0x2f   : > { %s181_s26 = sand.u32 1, %s1338_s17   ;;  %s969_s6 = sshll.u32 %s1342_s18, 11 }
  0x30   : > { %p1474_p12 = por %p1819_p10, %p39_p2  ;;  %s931_s7 = sshll.u32 %s181_s26, 7 }
  0x31   : > { %s1483_s10 = scalar_lea.hbm %s1807_s0, %s969_s6  ;;  %s185_s25 = scalar_lea.vmem [#allocation2], %s931_s7 }
  0x32   : > { %s192_s28 = sshll.u32 %s185_s25, 4  ;;  %p1485_p11 = pnand %p1090_p6, %p41_p8  ;;  %s1489_s28 = int_to_ptr.vmem [resolvable:$true] %s192_s28 }
  0x33   : > { %s1491_s11 = scalar_lea.sflag [#allocation3], %s181_s26  ;;  %s1182_s14 = scalar_lea.hbm %s1483_s10, 2048 }
  0x34   : > { %p1183_p13 = scmp.ne.s32.totalorder %s1483_s10, %s1182_s14  ;;  %p1184_p0 = pneg %p1485_p11 }
  0x35   : > { %s1187_s7 = scalar_lea.hbm %s1807_s0, 4096  ;;  %p1188_p7 = scmp.lt.u32.totalorder %s1483_s10, %s1807_s0 }
  0x36   : > { %p1185_p3 = pnand %p1184_p0, %p1183_p13  ;;  %p1189_p9 = scmp.lt.u32.totalorder %s1187_s7, %s1182_s14 }
  0x37   : > { %p1191_p2 = scmp.lt.u32.totalorder %s1182_s14, %s1483_s10 }
  0x38   : > { %p1186_p5 = pneg %p1185_p3  ;;  %p1190_p1 = por %p1189_p9, %p1188_p7 }
  0x3a   : > { %p1192_p4 = por %p1191_p2, %p1190_p1 }
  0x3c   : > { %p1193_p6 = pnand %p1192_p4, %p1186_p5 }
  0x3e   : > { %1196 = shalt.err (!%p1193_p6)
}
  0x3f   : > { %s1197_s26 = scalar_lea.vmem %s1489_s28, 2048  ;;  %s1347_s25 = smov [#allocation2]  }
  0x40   : > { %p1198_p8 = scmp.ne.s32.totalorder %s1489_s28, %s1197_s26  ;;  %s1202_s24 = sshll.u32 %s1347_s25, 4  ;;  %s1203_s24 = int_to_ptr.vmem [resolvable:$false] %s1202_s24 }
  0x41   : > { %s1204_s6 = scalar_lea.vmem %s1203_s24, 4096  ;;  %p1205_p3 = scmp.lt.s32.totalorder %s1489_s28, %s1203_s24 }
  0x42   : > { %p1200_p10 = pnand %p1198_p8, %p1184_p0  ;;  %p1206_p7 = scmp.lt.s32.totalorder %s1204_s6, %s1197_s26 }
  0x44   : > { %p1201_p13 = pneg %p1200_p10  ;;  %p1207_p9 = por %p1206_p7, %p1205_p3 }
  0x46   : > { %p1208_p1 = pnand %p1207_p9, %p1201_p13 }
  0x48   : > { %1211 = shalt.err (!%p1208_p1)
}
  0x49   : > { %1078 = dma.hbm_to_vmem [thread:$0]  (!%p1485_p11), %s1483_s10, 2048, %s1489_s28, %s1491_s11, %s1345_s12, %s1345_s12, %s1346_s13  }
  0x4a   : > { %p1822_p0 = scmp.ne.s32.totalorder %s1817_s23, 0 }
  0x4b   : > { %s1525_s14 = sand.u32 (!%p1822_p0), 1, %s1334_s16   ;;  %p1823_p5 = scmp.ne.s32.totalorder (!%p1822_p0), %s1815_s21, 0 }
  0x4c   : > { %204 = sbr.rel (%p1822_p0) target bundleno = 456 (0x1c8), region = 28  ;;  %s935_s7 = sshll.u32 (!%p1822_p0), %s1525_s14, 7 }
  0x4d   : > { %s207_s8 = scalar_lea.sflag (!%p1822_p0), [#allocation3], %s1525_s14  ;;  %s1529_s9 = scalar_lea.vmem (!%p1822_p0), [#allocation2], %s935_s7 }
  0x53   : > { %1313 = dma.done.wait (%p1823_p5), %s207_s8, 2048  }
  0x54   : > { %1315 = vsyncadd (%p1823_p5), %s207_s8, 4294965248  ;;  %p1824_p11 = scmp.eq.s32.totalorder %s1399_s19, 0 }
  0x56   : > { %1317 = dma.done.wait (%p1824_p11), [#allocation6], 1024   ;;  %p1825_p2 = pmov %p1824_p11 }
  0x57   : > { %v1130_v0 = vld [vmem:[#allocation5] sm:$0xff]   ;;  %v1131_v1 = vld [vmem:[#allocation5 + $0x8] sm:$0xff]   ;;  %v1132_v2 = vld [vmem:[#allocation5 + $0x10] sm:$0xff]   ;;  %s937_s21 = sshll.u32 %s1525_s14, 8  ;;  %s970_s12 = sshll.u32 %s1399_s19, 12 }
  0x58   : > { %1319 = vsyncadd (%p1825_p2), [#allocation6], 4294966272  ;;  %995 = vmatprep.subr.bf16.mxu0 %v1130_v0  ;;  %1043 = vmatprep.subr.bf16.mxu1 %v1130_v0  ;;  %v1133_v3 = vld [vmem:[#allocation5 + $0x18] sm:$0xff]   ;;  %v1138_v4 = vld [vmem:[%s1529_s9] sm:$0xff]   ;;  %s1558_s23 = scalar_lea.vmem [#allocation7], %s937_s21  ;;  %s1630_s29 = scalar_lea.hbm %s1809_s2, %s970_s12 }
  0x59   : > { %996 = vmatpush3.bf16.msra.mxu0 %v1130_v0  ;;  %1051 = vmatpush3.bf16.msra.mxu1 %v1130_v0  ;;  %v1134_v5 = vld [vmem:[#allocation5 + $0x20] sm:$0xff]   ;;  %v1135_v6 = vld [vmem:[#allocation5 + $0x28] sm:$0xff]   ;;  %v1136_v8 = vld [vmem:[#allocation5 + $0x30] sm:$0xff]   ;;  %s765_s13 = sshll.u32 %s1558_s23, 4  ;;  %s744_s11 = scalar_lea.sflag [#allocation4], %s1525_s14  ;;  %s1632_s13 = int_to_ptr.vmem [resolvable:$true] %s765_s13 }
  0x5a   : > { %997 = vmatprep.subr.bf16.mxu0 %v1131_v1  ;;  %1044 = vmatprep.subr.bf16.mxu1 %v1131_v1  ;;  %v1146_v7 = vld [vmem:[%s1529_s9 + $0x40] sm:$0xff]   ;;  %v1137_v9 = vld [vmem:[#allocation5 + $0x38] sm:$0xff]   ;;  %v1139_v10 = vld [vmem:[%s1529_s9 + $0x8] sm:$0xff]   ;;  %s1212_s26 = scalar_lea.vmem %s1632_s13, 4096  ;;  %s1348_s25 = smov [#allocation7]  }
  0x5b   : > { %1011 = vmatprep.mubr.bf16.mxu0 %v1138_v4  ;;  %1027 = vmatprep.mubr.bf16.mxu1 %v1146_v7  ;;  %v1147_v11 = vld [vmem:[%s1529_s9 + $0x48] sm:$0xff]   ;;  %v1140_v12 = vld [vmem:[%s1529_s9 + $0x10] sm:$0xff]   ;;  %v1141_v14 = vld [vmem:[%s1529_s9 + $0x18] sm:$0xff]   ;;  %p1213_p4 = scmp.ne.s32.totalorder %s1632_s13, %s1212_s26  ;;  %s1216_s24 = sshll.u32 %s1348_s25, 4  ;;  %s1217_s24 = int_to_ptr.vmem [resolvable:$false] %s1216_s24 }
  0x5c   : > { %v1148_v13 = vld [vmem:[%s1529_s9 + $0x50] sm:$0xff]   ;;  %v1149_v15 = vld [vmem:[%s1529_s9 + $0x58] sm:$0xff]   ;;  %v1142_v16 = vld [vmem:[%s1529_s9 + $0x20] sm:$0xff]   ;;  %s1218_s6 = scalar_lea.vmem %s1217_s24, 8192  ;;  %p1219_p10 = scmp.lt.s32.totalorder %s1632_s13, %s1217_s24 }
  0x5d   : > { %998 = vmatpush3.bf16.msra.mxu0 %v1131_v1  ;;  %1052 = vmatpush3.bf16.msra.mxu1 %v1131_v1  ;;  %v1150_v17 = vld [vmem:[%s1529_s9 + $0x60] sm:$0xff]   ;;  %v1143_v18 = vld [vmem:[%s1529_s9 + $0x28] sm:$0xff]   ;;  %v1144_v20 = vld [vmem:[%s1529_s9 + $0x30] sm:$0xff]   ;;  %p1214_p6 = pnand %p1213_p4, %p1474_p12  ;;  %p1220_p13 = scmp.lt.s32.totalorder %s1218_s6, %s1212_s26 }
  0x5e   : > { %999 = vmatprep.subr.bf16.mxu0 %v1132_v2  ;;  %1045 = vmatprep.subr.bf16.mxu1 %v1132_v2  ;;  %v1151_v19 = vld [vmem:[%s1529_s9 + $0x68] sm:$0xff]   ;;  %v1152_v21 = vld [vmem:[%s1529_s9 + $0x70] sm:$0xff]   ;;  %v1145_v22 = vld [vmem:[%s1529_s9 + $0x38] sm:$0xff]  }
  0x5f   : > { %v1153_v23 = vld [vmem:[%s1529_s9 + $0x78] sm:$0xff]   ;;  %p1215_p8 = pneg %p1214_p6  ;;  %p1221_p3 = por %p1220_p13, %p1219_p10 }
  0x61   : > { %1000 = vmatpush3.bf16.msra.mxu0 %v1132_v2  ;;  %1053 = vmatpush3.bf16.msra.mxu1 %v1132_v2  ;;  %p1222_p7 = pnand %p1221_p3, %p1215_p8 }
  0x62   : > { %1001 = vmatprep.subr.bf16.mxu0 %v1133_v3  ;;  %1046 = vmatprep.subr.bf16.mxu1 %v1133_v3 }
  0x65   : > { %1002 = vmatpush3.bf16.msra.mxu0 %v1133_v3  ;;  %1054 = vmatpush3.bf16.msra.mxu1 %v1133_v3 }
  0x66   : > { %1003 = vmatprep.subr.bf16.mxu0 %v1134_v5  ;;  %1047 = vmatprep.subr.bf16.mxu1 %v1134_v5 }
  0x69   : > { %1004 = vmatpush3.bf16.msra.mxu0 %v1134_v5  ;;  %1055 = vmatpush3.bf16.msra.mxu1 %v1134_v5 }
  0x6a   : > { %1005 = vmatprep.subr.bf16.mxu0 %v1135_v6  ;;  %1048 = vmatprep.subr.bf16.mxu1 %v1135_v6 }
  0x6d   : > { %1006 = vmatpush3.bf16.msra.mxu0 %v1135_v6  ;;  %1056 = vmatpush3.bf16.msra.mxu1 %v1135_v6 }
  0x6e   : > { %1007 = vmatprep.subr.bf16.mxu0 %v1136_v8  ;;  %1049 = vmatprep.subr.bf16.mxu1 %v1136_v8 }
  0x71   : > { %1008 = vmatpush3.bf16.msra.mxu0 %v1136_v8  ;;  %1057 = vmatpush3.bf16.msra.mxu1 %v1136_v8 }
  0x72   : > { %1009 = vmatprep.subr.bf16.mxu0 %v1137_v9  ;;  %1050 = vmatprep.subr.bf16.mxu1 %v1137_v9 }
  0x75   : > { %1010 = vmatpush3.bf16.msra.mxu0 %v1137_v9  ;;  %1058 = vmatpush3.bf16.msra.mxu1 %v1137_v9 }
  0x78   : > { %1012 = vmatmul.mubr.bf16.vlgmr.msra.gmra.mrb[0].mxu0 %v1139_v10  ;;  %1028 = vmatmul.mubr.bf16.vlgmr.msra.gmra.mrb[0].mxu1 %v1147_v11 }
  0x79   : > { %1015 = vmatprep.mubr.bf16.mxu0 %v1140_v12  ;;  %1031 = vmatprep.mubr.bf16.mxu1 %v1148_v13 }
  0x80   : > { %1016 = vmatmul.mubr.bf16.gmra.mrb[4].mxu0 %v1141_v14  ;;  %1032 = vmatmul.mubr.bf16.gmra.mrb[4].mxu1 %v1149_v15 }
  0x81   : > { %1019 = vmatprep.mubr.bf16.mxu0 %v1142_v16  ;;  %1035 = vmatprep.mubr.bf16.mxu1 %v1150_v17 }
  0x88   : > { %1020 = vmatmul.mubr.bf16.gmra.mrb[8].mxu0 %v1143_v18  ;;  %1036 = vmatmul.mubr.bf16.gmra.mrb[8].mxu1 %v1151_v19 }
  0x89   : > { %1023 = vmatprep.mubr.bf16.mxu0 %v1144_v20  ;;  %1039 = vmatprep.mubr.bf16.mxu1 %v1152_v21 }
  0x90   : > { %1024 = vmatmul.mubr.bf16.gmra.mrb[12].mxu0 %v1145_v22  ;;  %1040 = vmatmul.mubr.bf16.gmra.mrb[12].mxu1 %v1153_v23 }
 0x14b   : > { %v1013_v24 = vpop.f32.mrb[0].mxu0  ;;  %v1556_v25 = vpop.f32.mrb[0].mxu1 }
 0x14c   : > { %605 = vst [vmem:[%s1558_s23 + $0x10] sm:$0xff] %v1013_v24  ;;  %v476_v26 = vpop.f32.mrb[1].mxu0  ;;  %621 = vst [vmem:[%s1558_s23 + $0x90] sm:$0xff] %v1556_v25  ;;  %v1563_v27 = vpop.f32.mrb[1].mxu1  ;;  %v675_v35 = vmul.f32 %v1013_v24, %v1013_v24 }
 0x14d   : > { %603 = vst [vmem:[%s1558_s23] sm:$0xff] %v476_v26  ;;  %v1014_v28 = vpop.f32.mrb[2].mxu0  ;;  %619 = vst [vmem:[%s1558_s23 + $0x80] sm:$0xff] %v1563_v27  ;;  %v1568_v29 = vpop.f32.mrb[2].mxu1  ;;  %v673_v32 = vmul.f32 %v476_v26, %v476_v26 }
 0x14e   : > { %606 = vst [vmem:[%s1558_s23 + $0x18] sm:$0xff] %v1014_v28  ;;  %v479_v30 = vpop.f32.mrb[3].mxu0  ;;  %622 = vst [vmem:[%s1558_s23 + $0x98] sm:$0xff] %v1568_v29  ;;  %v1573_v31 = vpop.f32.mrb[3].mxu1  ;;  %v676_v38 = vmul.f32 %v1014_v28, %v1014_v28 }
 0x14f   : > { %604 = vst [vmem:[%s1558_s23 + $0x8] sm:$0xff] %v479_v30  ;;  %v635_v33 = vadd.f32 %v479_v30, %v476_v26  ;;  %v674_v34 = vmul.f32 %v479_v30, %v479_v30  ;;  %620 = vst [vmem:[%s1558_s23 + $0x88] sm:$0xff] %v1573_v31 }
 0x151   : > { %v636_v36 = vadd.f32 %v1013_v24, %v635_v33  ;;  %v705_v37 = vadd.f32 %v674_v34, %v673_v32 }
 0x153   : > { %v706_v39 = vadd.f32 %v705_v37, %v675_v35  ;;  %v1017_v40 = vpop.f32.mrb[4].mxu0  ;;  %v637_v41 = vadd.f32 %v1014_v28, %v636_v36  ;;  %v1578_v42 = vpop.f32.mrb[4].mxu1 }
 0x154   : > { %609 = vst [vmem:[%s1558_s23 + $0x30] sm:$0xff] %v1017_v40  ;;  %v492_v43 = vpop.f32.mrb[5].mxu0  ;;  %625 = vst [vmem:[%s1558_s23 + $0xb0] sm:$0xff] %v1578_v42  ;;  %v1583_v44 = vpop.f32.mrb[5].mxu1  ;;  %v679_v55 = vmul.f32 %v1017_v40, %v1017_v40 }
 0x155   : > { %607 = vst [vmem:[%s1558_s23 + $0x20] sm:$0xff] %v492_v43  ;;  %v638_v45 = vadd.f32 %v637_v41, %v492_v43  ;;  %v677_v46 = vmul.f32 %v492_v43, %v492_v43  ;;  %v707_v47 = vadd.f32 %v706_v39, %v676_v38  ;;  %v1018_v48 = vpop.f32.mrb[6].mxu0  ;;  %623 = vst [vmem:[%s1558_s23 + $0xa0] sm:$0xff] %v1583_v44  ;;  %v1588_v49 = vpop.f32.mrb[6].mxu1 }
 0x156   : > { %610 = vst [vmem:[%s1558_s23 + $0x38] sm:$0xff] %v1018_v48  ;;  %v495_v50 = vpop.f32.mrb[7].mxu0  ;;  %626 = vst [vmem:[%s1558_s23 + $0xb8] sm:$0xff] %v1588_v49  ;;  %v1593_v51 = vpop.f32.mrb[7].mxu1  ;;  %v680_v58 = vmul.f32 %v1018_v48, %v1018_v48 }
 0x157   : > { %v708_v52 = vadd.f32 %v707_v47, %v677_v46  ;;  %608 = vst [vmem:[%s1558_s23 + $0x28] sm:$0xff] %v495_v50  ;;  %v639_v53 = vadd.f32 %v638_v45, %v495_v50  ;;  %v678_v54 = vmul.f32 %v495_v50, %v495_v50  ;;  %624 = vst [vmem:[%s1558_s23 + $0xa8] sm:$0xff] %v1593_v51 }
 0x159   : > { %v640_v56 = vadd.f32 %v1017_v40, %v639_v53  ;;  %v709_v57 = vadd.f32 %v708_v52, %v678_v54 }
 0x15b   : > { %v710_v59 = vadd.f32 %v709_v57, %v679_v55  ;;  %v1021_v60 = vpop.f32.mrb[8].mxu0  ;;  %v641_v61 = vadd.f32 %v1018_v48, %v640_v56  ;;  %v1598_v62 = vpop.f32.mrb[8].mxu1 }
 0x15c   : > { %613 = vst [vmem:[%s1558_s23 + $0x50] sm:$0xff] %v1021_v60  ;;  %v508_v63 = vpop.f32.mrb[9].mxu0  ;;  %629 = vst [vmem:[%s1558_s23 + $0xd0] sm:$0xff] %v1598_v62  ;;  %v1603_v0 = vpop.f32.mrb[9].mxu1  ;;  %v683_v11 = vmul.f32 %v1021_v60, %v1021_v60 }
 0x15d   : > { %611 = vst [vmem:[%s1558_s23 + $0x40] sm:$0xff] %v508_v63  ;;  %v642_v1 = vadd.f32 %v641_v61, %v508_v63  ;;  %v681_v2 = vmul.f32 %v508_v63, %v508_v63  ;;  %v711_v3 = vadd.f32 %v710_v59, %v680_v58  ;;  %v1022_v4 = vpop.f32.mrb[10].mxu0  ;;  %627 = vst [vmem:[%s1558_s23 + $0xc0] sm:$0xff] %v1603_v0  ;;  %v1608_v5 = vpop.f32.mrb[10].mxu1 }
 0x15e   : > { %614 = vst [vmem:[%s1558_s23 + $0x58] sm:$0xff] %v1022_v4  ;;  %v511_v6 = vpop.f32.mrb[11].mxu0  ;;  %630 = vst [vmem:[%s1558_s23 + $0xd8] sm:$0xff] %v1608_v5  ;;  %v1613_v7 = vpop.f32.mrb[11].mxu1  ;;  %v684_v14 = vmul.f32 %v1022_v4, %v1022_v4 }
 0x15f   : > { %v712_v8 = vadd.f32 %v711_v3, %v681_v2  ;;  %612 = vst [vmem:[%s1558_s23 + $0x48] sm:$0xff] %v511_v6  ;;  %v643_v9 = vadd.f32 %v642_v1, %v511_v6  ;;  %v682_v10 = vmul.f32 %v511_v6, %v511_v6  ;;  %628 = vst [vmem:[%s1558_s23 + $0xc8] sm:$0xff] %v1613_v7 }
 0x161   : > { %v644_v12 = vadd.f32 %v1021_v60, %v643_v9  ;;  %v713_v13 = vadd.f32 %v712_v8, %v682_v10 }
 0x163   : > { %v714_v15 = vadd.f32 %v713_v13, %v683_v11  ;;  %v1025_v16 = vpop.f32.mrb[12].mxu0  ;;  %v645_v17 = vadd.f32 %v1022_v4, %v644_v12  ;;  %v1620_v18 = vpop.f32.mrb[12].mxu1 }
 0x164   : > { %617 = vst [vmem:[%s1558_s23 + $0x70] sm:$0xff] %v1025_v16  ;;  %v524_v19 = vpop.f32.mrb[13].mxu0  ;;  %633 = vst [vmem:[%s1558_s23 + $0xf0] sm:$0xff] %v1620_v18  ;;  %v1625_v20 = vpop.f32.mrb[13].mxu1 }
 0x165   : > { %615 = vst [vmem:[%s1558_s23 + $0x60] sm:$0xff] %v524_v19  ;;  %v646_v21 = vadd.f32 %v645_v17, %v524_v19  ;;  %v685_v22 = vmul.f32 %v524_v19, %v524_v19  ;;  %v715_v23 = vadd.f32 %v714_v15, %v684_v14  ;;  %v1026_v24 = vpop.f32.mrb[14].mxu0  ;;  %631 = vst [vmem:[%s1558_s23 + $0xe0] sm:$0xff] %v1625_v20  ;;  %v1637_v26 = vpop.f32.mrb[14].mxu1 }
 0x166   : > { %618 = vst [vmem:[%s1558_s23 + $0x78] sm:$0xff] %v1026_v24  ;;  %v527_v28 = vpop.f32.mrb[15].mxu0  ;;  %634 = vst [vmem:[%s1558_s23 + $0xf8] sm:$0xff] %v1637_v26  ;;  %v1642_v30 = vpop.f32.mrb[15].mxu1 }
 0x167   : > { %v716_v32 = vadd.f32 %v715_v23, %v685_v22  ;;  %616 = vst [vmem:[%s1558_s23 + $0x68] sm:$0xff] %v527_v28  ;;  %v647_v33 = vadd.f32 %v646_v21, %v527_v28  ;;  %v686_v34 = vmul.f32 %v527_v28, %v527_v28  ;;  %632 = vst [vmem:[%s1558_s23 + $0xe8] sm:$0xff] %v1642_v30 }
 0x168   : > { %1225 = shalt.err (!%p1222_p7)
}
 0x169   : > { %s1226_s7 = scalar_lea.hbm %s1630_s29, 4096  ;;  %s1230_s21 = scalar_lea.hbm %s1809_s2, 8192 }
 0x16a   : > { %p1227_p9 = scmp.ne.s32.totalorder %s1630_s29, %s1226_s7  ;;  %p1231_p5 = scmp.lt.u32.totalorder %s1630_s29, %s1809_s2 }
 0x16b   : > { %p1232_p11 = scmp.lt.u32.totalorder %s1230_s21, %s1226_s7  ;;  %p1234_p4 = scmp.lt.u32.totalorder %s1226_s7, %s1630_s29 }
 0x16c   : > { %p1228_p1 = pnand %p1227_p9, %p1474_p12 }
 0x16d   : > { %p1233_p2 = por %p1232_p11, %p1231_p5 }
 0x16e   : > { %p1229_p0 = pneg %p1228_p1 }
 0x16f   : > { %p1235_p6 = por %p1234_p4, %p1233_p2 }
 0x171   : > { %p1236_p8 = pnand %p1235_p6, %p1229_p0 }
 0x173   : > { %1239 = shalt.err (!%p1236_p8)
}
 0x174   : > { %s1349_s10 = smov 128   ;;  %s1350_s28 = smov 8   ;;  %v687_v35 = vmul.f32 %v1025_v16, %v1025_v16  ;;  %v648_v36 = vadd.f32 %v1025_v16, %v647_v33  ;;  %v717_v37 = vadd.f32 %v716_v32, %v686_v34  ;;  %v688_v38 = vmul.f32 %v1026_v24, %v1026_v24 }
 0x175   : > { %1065 = dma.vmem_to_hbm [thread:$0]  (%p1474_p12), %s1632_s13, 4096, %s1630_s29, %s744_s11, %s1349_s10, %s1349_s10, %s1350_s28   ;;  %v689_v41 = vmul.f32 %v1563_v27, %v1563_v27  ;;  %v690_v48 = vmul.f32 %v1573_v31, %v1573_v31  ;;  %v691_v50 = vmul.f32 %v1556_v25, %v1556_v25  ;;  %v692_v54 = vmul.f32 %v1568_v29, %v1568_v29 }
 0x176   : > { %v718_v39 = vadd.f32 %v717_v37, %v687_v35  ;;  %v649_v40 = vadd.f32 %v1026_v24, %v648_v36  ;;  %v694_v60 = vmul.f32 %v1593_v51, %v1593_v51  ;;  %v698_v8 = vmul.f32 %v1613_v7, %v1613_v7  ;;  %s748_s13 = sand.u32 1, %s1399_s19   ;;  %s965_s29 = sshll.u32 %s1399_s19, 4 }
 0x177   : > { %v703_v16 = vmul.f32 %v1620_v18, %v1620_v18  ;;  %v704_v19 = vmul.f32 %v1637_v26, %v1637_v26  ;;  %s240_s11 = scalar_lea.vmem [#allocation8], %s1525_s14  ;;  %s246_s25 = scalar_lea.vmem [#allocation10], %s1525_s14 }
 0x178   : > { %v650_v43 = vadd.f32 %v649_v40, %v1563_v27  ;;  %v719_v45 = vadd.f32 %v718_v39, %v688_v38  ;;  %v693_v27 = vmul.f32 %v1583_v44, %v1583_v44  ;;  %s781_s26 = sshll.u32 %s240_s11, 4  ;;  %s794_s24 = sshll.u32 %s246_s25, 4  ;;  %s1730_s26 = int_to_ptr.vmem [resolvable:$true] %s781_s26  ;;  %s1737_s24 = int_to_ptr.vmem [resolvable:$true] %s794_s24 }
 0x179   : > { %s1728_s8 = scalar_lea.hbm %s1810_s3, %s965_s29  ;;  %s1735_s21 = scalar_lea.hbm %s1811_s4, %s965_s29 }
 0x17a   : > { %v720_v46 = vadd.f32 %v719_v45, %v689_v41  ;;  %v651_v47 = vadd.f32 %v650_v43, %v1573_v31  ;;  %s1739_s23 = scalar_lea.sflag [#allocation9], %s748_s13  ;;  %s1240_s12 = scalar_lea.vmem %s1730_s26, 16 }
 0x17b   : > { %p1241_p10 = scmp.ne.s32.totalorder %s1730_s26, %s1240_s12  ;;  %s1351_s10 = smov [#allocation8]  }
 0x17c   : > { %v652_v52 = vadd.f32 %v1556_v25, %v651_v47  ;;  %v721_v53 = vadd.f32 %v720_v46, %v690_v48  ;;  %v695_v25 = vmul.f32 %v1578_v42, %v1578_v42  ;;  %s1244_s28 = sshll.u32 %s1351_s10, 4  ;;  %s1245_s28 = int_to_ptr.vmem [resolvable:$false] %s1244_s28 }
 0x17d   : > { %p1242_p13 = pnand %p1241_p10, %p1474_p12  ;;  %s1246_s6 = scalar_lea.vmem %s1245_s28, 32 }
 0x17e   : > { %v722_v55 = vadd.f32 %v721_v53, %v691_v50  ;;  %v653_v56 = vadd.f32 %v1568_v29, %v652_v52  ;;  %v696_v29 = vmul.f32 %v1588_v49, %v1588_v49  ;;  %p1247_p7 = scmp.lt.s32.totalorder %s1730_s26, %s1245_s28  ;;  %p1248_p9 = scmp.lt.s32.totalorder %s1246_s6, %s1240_s12 }
 0x17f   : > { %p1243_p3 = pneg %p1242_p13 }
 0x180   : > { %v654_v57 = vadd.f32 %v653_v56, %v1583_v44  ;;  %v723_v58 = vadd.f32 %v722_v55, %v692_v54  ;;  %v697_v44 = vmul.f32 %v1603_v0, %v1603_v0  ;;  %p1249_p1 = por %p1248_p9, %p1247_p7 }
 0x182   : > { %v724_v59 = vadd.f32 %v723_v58, %v693_v27  ;;  %v655_v31 = vadd.f32 %v654_v57, %v1593_v51  ;;  %p1250_p0 = pnand %p1249_p1, %p1243_p3 }
 0x184   : > { %v656_v61 = vadd.f32 %v1578_v42, %v655_v31  ;;  %v725_v63 = vadd.f32 %v724_v59, %v694_v60  ;;  %v699_v42 = vmul.f32 %v1598_v62, %v1598_v62 }
 0x186   : > { %v726_v1 = vadd.f32 %v725_v63, %v695_v25  ;;  %v657_v2 = vadd.f32 %v1588_v49, %v656_v61  ;;  %v700_v49 = vmul.f32 %v1608_v5, %v1608_v5 }
 0x188   : > { %v658_v3 = vadd.f32 %v657_v2, %v1603_v0  ;;  %v727_v4 = vadd.f32 %v726_v1, %v696_v29  ;;  %v701_v0 = vmul.f32 %v1625_v20, %v1625_v20 }
 0x18a   : > { %v728_v6 = vadd.f32 %v727_v4, %v697_v44  ;;  %v659_v51 = vadd.f32 %v658_v3, %v1613_v7 }
 0x18c   : > { %v660_v9 = vadd.f32 %v1598_v62, %v659_v51  ;;  %v729_v10 = vadd.f32 %v728_v6, %v698_v8  ;;  %v702_v62 = vmul.f32 %v1642_v30, %v1642_v30 }
 0x18e   : > { %v730_v11 = vadd.f32 %v729_v10, %v699_v42  ;;  %v661_v12 = vadd.f32 %v1608_v5, %v660_v9 }
 0x190   : > { %v662_v13 = vadd.f32 %v661_v12, %v1625_v20  ;;  %v731_v14 = vadd.f32 %v730_v11, %v700_v49 }
 0x192   : > { %v732_v15 = vadd.f32 %v731_v14, %v701_v0  ;;  %v663_v7 = vadd.f32 %v662_v13, %v1642_v30 }
 0x194   : > { %v664_v5 = vadd.f32 %v1620_v18, %v663_v7  ;;  %v733_v17 = vadd.f32 %v732_v15, %v702_v62 }
 0x196   : > { %v665_v20 = vadd.f32 %v1637_v26, %v664_v5  ;;  %v734_v21 = vadd.f32 %v733_v17, %v703_v16 }
 0x198   : > { %v666_v22 = vrot.slane %v665_v20, 4  ;;  %v735_v23 = vadd.f32 %v734_v21, %v704_v19 }
 0x19a   : > { %v667_v24 = vadd.f32 %v666_v22, %v665_v20  ;;  %v736_v28 = vrot.slane %v735_v23, 4 }
 0x19c   : > { %v668_v30 = vrot.slane %v667_v24, 2  ;;  %v737_v32 = vadd.f32 %v736_v28, %v735_v23 }
 0x19e   : > { %v669_v33 = vadd.f32 %v668_v30, %v667_v24  ;;  %v738_v34 = vrot.slane %v737_v32, 2 }
 0x1a0   : > { %v670_v18 = vrot.slane %v669_v33, 1  ;;  %v739_v35 = vadd.f32 %v738_v34, %v737_v32 }
 0x1a2   : > { %v740_v26 = vrot.slane %v739_v35, 1  ;;  %v671_v36 = vadd.f32 %v670_v18, %v669_v33 }
 0x1a4   : > { %672 = vst [vmem:[%s240_s11] sm:$0x1] %v671_v36  ;;  %v741_v37 = vadd.f32 %v740_v26, %v739_v35 }
 0x1a5   : > { %1253 = shalt.err (!%p1250_p0)
}
 0x1a6   : > { %s1254_s13 = scalar_lea.hbm %s1728_s8, 16  ;;  %s1258_s7 = scalar_lea.hbm %s1810_s3, 32 }
 0x1a7   : > { %p1255_p5 = scmp.ne.s32.totalorder %s1728_s8, %s1254_s13  ;;  %p1259_p4 = scmp.lt.u32.totalorder %s1728_s8, %s1810_s3 }
 0x1a8   : > { %p1260_p6 = scmp.lt.u32.totalorder %s1258_s7, %s1254_s13  ;;  %p1262_p10 = scmp.lt.u32.totalorder %s1254_s13, %s1728_s8 }
 0x1a9   : > { %p1256_p11 = pnand %p1255_p5, %p1474_p12 }
 0x1aa   : > { %p1261_p8 = por %p1260_p6, %p1259_p4 }
 0x1ab   : > { %p1257_p2 = pneg %p1256_p11 }
 0x1ac   : > { %p1263_p13 = por %p1262_p10, %p1261_p8 }
 0x1ae   : > { %p1264_p3 = pnand %p1263_p13, %p1257_p2 }
 0x1b0   : > { %1267 = shalt.err (!%p1264_p3)
}
 0x1b1   : > { %1066 = dma.vmem_to_hbm [thread:$0]  (%p1474_p12), %s1730_s26, 16, %s1728_s8, %s1739_s23   ;;  %742 = vst [vmem:[%s246_s25] sm:$0x1] %v741_v37 }
 0x1b2   : > { %s1268_s12 = scalar_lea.vmem %s1737_s24, 16  ;;  %s1352_s10 = smov [#allocation10]  }
 0x1b3   : > { %p1269_p7 = scmp.ne.s32.totalorder %s1737_s24, %s1268_s12  ;;  %s1272_s28 = sshll.u32 %s1352_s10, 4  ;;  %s1273_s28 = int_to_ptr.vmem [resolvable:$false] %s1272_s28 }
 0x1b4   : > { %s1274_s6 = scalar_lea.vmem %s1273_s28, 32  ;;  %p1275_p0 = scmp.lt.s32.totalorder %s1737_s24, %s1273_s28 }
 0x1b5   : > { %p1270_p9 = pnand %p1269_p7, %p1474_p12  ;;  %p1276_p5 = scmp.lt.s32.totalorder %s1274_s6, %s1268_s12 }
 0x1b7   : > { %p1271_p1 = pneg %p1270_p9  ;;  %p1277_p11 = por %p1276_p5, %p1275_p0 }
 0x1b9   : > { %p1278_p2 = pnand %p1277_p11, %p1271_p1 }
 0x1bb   : > { %1281 = shalt.err (!%p1278_p2)
}
 0x1bc   : > { %s1282_s14 = scalar_lea.hbm %s1735_s21, 16  ;;  %s1286_s8 = scalar_lea.hbm %s1811_s4, 32 }
 0x1bd   : > { %p1283_p4 = scmp.ne.s32.totalorder %s1735_s21, %s1282_s14  ;;  %p1287_p10 = scmp.lt.u32.totalorder %s1735_s21, %s1811_s4 }
 0x1be   : > { %p1288_p13 = scmp.lt.u32.totalorder %s1286_s8, %s1282_s14  ;;  %p1290_p7 = scmp.lt.u32.totalorder %s1282_s14, %s1735_s21 }
 0x1bf   : > { %p1284_p6 = pnand %p1283_p4, %p1474_p12 }
 0x1c0   : > { %p1289_p3 = por %p1288_p13, %p1287_p10 }
 0x1c1   : > { %p1285_p8 = pneg %p1284_p6 }
 0x1c2   : > { %p1291_p9 = por %p1290_p7, %p1289_p3 }
 0x1c4   : > { %p1292_p1 = pnand %p1291_p9, %p1285_p8 }
 0x1c6   : > { %1295 = shalt.err (!%p1292_p1)
}
 0x1c7   : > { %1067 = dma.vmem_to_hbm [thread:$0]  (%p1474_p12), %s1737_s24, 16, %s1735_s21, %s1739_s23  }
 0x1c8 PF: > { %s806_s11 = sand.u32 1, %s1330_s15   ;;  %p1826_p0 = scmp.ne.s32.totalorder %s1816_s22, 0 }
 0x1c9   : > { %p1827_p5 = scmp.ge.s32.totalorder %s1342_s18, 2  ;;  %s807_s7 = scalar_lea.sflag [#allocation4], %s806_s11 }
 0x1cb   : > { %p1080_p11 = pnand %p1827_p5, %p1826_p0 }
 0x1cd   : > { %1321 = dma.done.wait (!%p1080_p11), %s807_s7, 4096  }
 0x1ce   : > { %1323 = vsyncadd (!%p1080_p11), %s807_s7, 4294963200  ;;  %s815_s19 = sand.u32 1, %s927_s20  }
 0x1cf   : > { %s816_s9 = scalar_lea.sflag [#allocation9], %s815_s19 }
 0x1d0   : > { %1325 = dma.done.wait (!%p1080_p11), %s816_s9, 32  }
 0x1d1   : > { %1327 = vsyncadd (!%p1080_p11), %s816_s9, 4294967264  ;;  %p22_p12 = scmp.ge.s32.totalorder %s1436_s27, 4   ;;  %s1828_s15 = smov %s1334_s16 }
 0x1d2   : > { %s1829_s16 = smov %s1338_s17  ;;  %s1830_s17 = smov %s1470_s30 }
 0x1d3   : > { %s1831_s18 = smov %s1436_s27  ;;  %24 = sbr.rel (!%p22_p12) target bundleno = 8 (0x8), region = 109 }
 0x1da   :  { %828 = vsyncpa [#allocation3], 1 }
 0x1db   :  { %830 = vsyncpa [#allocation3 + $0x1], 1 }
 0x1dc   :  { %831 = vsyncpa [#allocation6], 1 }
 0x1dd   :  { %832 = vsyncpa [#allocation4], 1 }
 0x1de   :  { %834 = vsyncpa [#allocation4 + $0x1], 1 }
 0x1df   :  { %835 = vsyncpa [#allocation9], 1 }
 0x1e0   :  { %837 = vsyncpa [#allocation9 + $0x1], 1 }

</bundles_post_ra>
